<compile_context>
chip_gen: v6e
topology: v6e:2x2x1
jax: 0.10.0
libtpu: 0.0.40
codegen_flags: <defaults>
</compile_context>

<pallas_src>
import functools

import jax
import jax.numpy as jnp
from jax.experimental import pallas as pl
from jax.experimental.pallas import tpu as pltpu

LANES = 128
SUBLANES = 8
MAX_BLOCK_ROWS = 4096        # (4096, 128) f32 = 2 MiB per input block
NUM_CORES = 2                # leading "parallel" grid axis (megacore / v7x)


def _rmse_partial_kernel(yhat_ref, y_ref, out_ref, acc_ref, *,
                         rows, block_rows, chunks, needs_mask):
    c = pl.program_id(0)          # parallel (core) axis
    j = pl.program_id(1)          # reduction axis over row blocks

    @pl.when(j == 0)
    def _():
        acc_ref[...] = jnp.zeros_like(acc_ref)

    d = yhat_ref[...].astype(jnp.float32) - y_ref[...].astype(jnp.float32)
    sq = d * d

    if needs_mask:
        # Use the *logical* (unclamped) block index: rows past `rows`
        # (ragged tail, oversized block, or a clamped duplicate block on the
        # second core) contribute exactly zero.
        row_start = (c * chunks + j) * block_rows
        row_ids = row_start + jax.lax.broadcasted_iota(jnp.int32, sq.shape, 0)
        sq = jnp.where(row_ids < rows, sq, 0.0)

    # Fold (block_rows, 128) -> (8, 128) vreg-shaped accumulator:
    # the reshape is a pure layout fold and the sum over axis 0 lowers to
    # plain VPU adds (no per-step XLU reduce, no SMEM round-trip).
    acc_ref[...] += sq.reshape(-1, SUBLANES, LANES).sum(axis=0)

    @pl.when(j == chunks - 1)
    def _():
        out_ref[...] = acc_ref[...]


def rmse_loss(yhat, y, eps=1e-6):
    """sqrt(mean((yhat - y)**2) + eps), matching torch.sqrt(MSELoss()(yhat, y) + eps)."""
    assert yhat.shape == y.shape
    n_elements = yhat.size

    # ravel + reshape to a lane-dense (rows, 128) view is layout-free for
    # contiguous inputs; only a tiny (<128 element) tail ever needs padding.
    flat_yhat = jnp.ravel(yhat)
    flat_y = jnp.ravel(y)
    rem = n_elements % LANES
    if rem:
        pad = LANES - rem
        flat_yhat = jnp.pad(flat_yhat, (0, pad))
        flat_y = jnp.pad(flat_y, (0, pad))

    rows = flat_yhat.size // LANES
    yhat2d = flat_yhat.reshape(rows, LANES)
    y2d = flat_y.reshape(rows, LANES)

    # dtype-aware sublane alignment: 8 (f32), 16 (bf16), 32 (int8/fp8).
    itemsize = min(jnp.dtype(yhat.dtype).itemsize, jnp.dtype(y.dtype).itemsize)
    sub_align = max(SUBLANES, 32 // max(int(itemsize), 1))
    block_rows = min(MAX_BLOCK_ROWS,
                     ((rows + sub_align - 1) // sub_align) * sub_align)

    total_blocks = -(-rows // block_rows)          # ceil div
    chunks = -(-total_blocks // NUM_CORES)         # row blocks per core
    # Mask needed if any loaded row lies past the real data (ragged tail,
    # oversized block, or duplicated/clamped block on the second core).
    needs_mask = (NUM_CORES * chunks * block_rows != rows)

    def in_map(c, j):
        # Clamp so a core that runs out of real blocks re-reads the last
        # valid block; the in-kernel mask zeroes its contribution.
        return (jnp.minimum(c * chunks + j, total_blocks - 1), 0)

    kernel = functools.partial(
        _rmse_partial_kernel,
        rows=rows, block_rows=block_rows, chunks=chunks, needs_mask=needs_mask)

    partials = pl.pallas_call(
        kernel,
        out_shape=jax.ShapeDtypeStruct((NUM_CORES * SUBLANES, LANES),
                                       jnp.float32),
        grid_spec=pltpu.PrefetchScalarGridSpec(
            num_scalar_prefetch=0,
            grid=(NUM_CORES, chunks),
            in_specs=[
                pl.BlockSpec((block_rows, LANES), in_map),
                pl.BlockSpec((block_rows, LANES), in_map),
            ],
            out_specs=pl.BlockSpec((SUBLANES, LANES), lambda c, j: (c, 0)),
            scratch_shapes=[pltpu.VMEM((SUBLANES, LANES), jnp.float32)],
        ),
        compiler_params=pltpu.CompilerParams(
            dimension_semantics=("parallel", "arbitrary"),
            vmem_limit_bytes=32 * 1024 * 1024,
        ),
    )(yhat2d, y2d)

    # Single cheap cross-lane/sublane reduce + sqrt outside the kernel.
    total = jnp.sum(partials)
    return jnp.sqrt(total / jnp.float32(n_elements) + jnp.float32(eps))


if __name__ == "__main__":
    key = jax.random.PRNGKey(0)
    k1, k2 = jax.random.split(key)
    # NCHW activations: batch=2, channels=4, spatial=16x16
    yhat = jax.random.normal(k1, (2, 4, 16, 16), dtype=jnp.float32)
    y = jax.random.normal(k2, (2, 4, 16, 16), dtype=jnp.float32)

    loss = rmse_loss(yhat, y)
    jax.block_until_ready(loss)

    # reference check in plain JAX
    ref = jnp.sqrt(jnp.mean((yhat - y) ** 2) + 1e-6)
    assert jnp.allclose(loss, ref, rtol=1e-5, atol=1e-6), (loss, ref)

    print("KERNEL_OK")
</pallas_src>

<mosaic_0001>
module attributes {stable_mosaic.version = 11 : i64} {
  func.func @_rmse_partial_kernel(%arg0: i32, %arg1: i32, %arg2: memref<16x128xf32, #tpu.memory_space<vmem>>, %arg3: memref<16x128xf32, #tpu.memory_space<vmem>>, %arg4: memref<8x128xf32, #tpu.memory_space<vmem>>, %arg5: memref<8x128xf32, #tpu.memory_space<vmem>>) attributes {dimension_semantics = [#tpu.dimension_semantics<parallel>, #tpu.dimension_semantics<arbitrary>], iteration_bounds = array<i64: 2, 1>, scalar_prefetch = 0 : i64, scratch_operands = 1 : i64, tpu.core_type = #tpu.core_type<tc>, window_params = [{transform_indices = @transform_0, window_bounds = array<i64: 16, 128>}, {transform_indices = @transform_1, window_bounds = array<i64: 16, 128>}, {transform_indices = @transform_2, window_bounds = array<i64: 8, 128>}]} {
    %c0_i32 = arith.constant 0 : i32
    %0 = arith.cmpi eq, %arg1, %c0_i32 : i32
    %1 = arith.extui %0 : i1 to i32
    %c0_i32_0 = arith.constant 0 : i32
    %2 = arith.cmpi ne, %1, %c0_i32_0 : i32
    scf.if %2 {
      %cst_12 = arith.constant 0.000000e+00 : f32
      %25 = vector.broadcast %cst_12 : f32 to vector<8x128xf32>
      %c0_13 = arith.constant 0 : index
      %c0_14 = arith.constant 0 : index
      %26 = vector.load %arg5[%c0_13, %c0_14] : memref<8x128xf32, #tpu.memory_space<vmem>>, vector<8x128xf32>
      tpu.vector_store %arg5[%c0_13, %c0_14], %25 {strides = array<i32>} : memref<8x128xf32, #tpu.memory_space<vmem>>, vector<8x128xf32>,
    } else {
    }
    %c0 = arith.constant 0 : index
    %c0_1 = arith.constant 0 : index
    %3 = vector.load %arg2[%c0, %c0_1] : memref<16x128xf32, #tpu.memory_space<vmem>>, vector<16x128xf32>
    %c0_2 = arith.constant 0 : index
    %c0_3 = arith.constant 0 : index
    %4 = vector.load %arg3[%c0_2, %c0_3] : memref<16x128xf32, #tpu.memory_space<vmem>>, vector<16x128xf32>
    %5 = arith.subf %3, %4 : vector<16x128xf32>
    %6 = arith.mulf %5, %5 : vector<16x128xf32>
    %c1_i32 = arith.constant 1 : i32
    %7 = arith.muli %arg0, %c1_i32 : i32
    %8 = arith.addi %7, %arg1 : i32
    %c16_i32 = arith.constant 16 : i32
    %9 = arith.muli %8, %c16_i32 : i32
    %10 = tpu.iota {dimensions = array<i32: 0>} : vector<16x128xi32>
    %11 = vector.broadcast %9 : i32 to vector<16x128xi32>
    %12 = arith.addi %11, %10 : vector<16x128xi32>
    %c16_i32_4 = arith.constant 16 : i32
    %13 = vector.broadcast %c16_i32_4 : i32 to vector<16x128xi32>
    %14 = arith.cmpi slt, %12, %13 : vector<16x128xi32>
    %cst = arith.constant 0.000000e+00 : f32
    %15 = vector.broadcast %cst : f32 to vector<16x128xf32>
    %16 = arith.select %14, %6, %15 : vector<16x128xi1>, vector<16x128xf32>
    %c0_5 = arith.constant 0 : index
    %c0_6 = arith.constant 0 : index
    %17 = vector.load %arg5[%c0_5, %c0_6] : memref<8x128xf32, #tpu.memory_space<vmem>>, vector<8x128xf32>
    %18 = vector.shape_cast %16 : vector<16x128xf32> to vector<2x8x128xf32>
    %cst_7 = arith.constant dense<0.000000e+00> : vector<8x128xf32>
    %19 = vector.multi_reduction <add>, %18, %cst_7 [0] : vector<2x8x128xf32> to vector<8x128xf32>
    %20 = arith.addf %17, %19 : vector<8x128xf32>
    %c0_8 = arith.constant 0 : index
    %c0_9 = arith.constant 0 : index
    %21 = vector.load %arg5[%c0_8, %c0_9] : memref<8x128xf32, #tpu.memory_space<vmem>>, vector<8x128xf32>
    tpu.vector_store %arg5[%c0_8, %c0_9], %20 {strides = array<i32>} : memref<8x128xf32, #tpu.memory_space<vmem>>, vector<8x128xf32>,
    %c0_i32_10 = arith.constant 0 : i32
    %22 = arith.cmpi eq, %arg1, %c0_i32_10 : i32
    %23 = arith.extui %22 : i1 to i32
    %c0_i32_11 = arith.constant 0 : i32
    %24 = arith.cmpi ne, %23, %c0_i32_11 : i32
    scf.if %24 {
      %c0_12 = arith.constant 0 : index
      %c0_13 = arith.constant 0 : index
      %25 = vector.load %arg5[%c0_12, %c0_13] : memref<8x128xf32, #tpu.memory_space<vmem>>, vector<8x128xf32>
      %c0_14 = arith.constant 0 : index
      %c0_15 = arith.constant 0 : index
      %26 = vector.load %arg4[%c0_14, %c0_15] : memref<8x128xf32, #tpu.memory_space<vmem>>, vector<8x128xf32>
      tpu.vector_store %arg4[%c0_14, %c0_15], %25 {strides = array<i32>} : memref<8x128xf32, #tpu.memory_space<vmem>>, vector<8x128xf32>,
    } else {
    }
    return
  }
  func.func @transform_0(%arg0: i32, %arg1: i32) -> (i32, i32) {
    %c1_i32 = arith.constant 1 : i32
    %0 = arith.muli %arg0, %c1_i32 : i32
    %1 = arith.addi %0, %arg1 : i32
    %c0_i32 = arith.constant 0 : i32
    %2 = arith.minsi %1, %c0_i32 : i32
    %c0_i32_0 = arith.constant 0 : i32
    %c0_i32_1 = arith.constant 0 : i32
    return %2, %c0_i32_0 : i32, i32
  }
  func.func @transform_1(%arg0: i32, %arg1: i32) -> (i32, i32) {
    %c1_i32 = arith.constant 1 : i32
    %0 = arith.muli %arg0, %c1_i32 : i32
    %1 = arith.addi %0, %arg1 : i32
    %c0_i32 = arith.constant 0 : i32
    %2 = arith.minsi %1, %c0_i32 : i32
    %c0_i32_0 = arith.constant 0 : i32
    %c0_i32_1 = arith.constant 0 : i32
    return %2, %c0_i32_0 : i32, i32
  }
  func.func @transform_2(%arg0: i32, %arg1: i32) -> (i32, i32) {
    %c0_i32 = arith.constant 0 : i32
    %c0_i32_0 = arith.constant 0 : i32
    return %arg0, %c0_i32 : i32, i32
  }
}

</mosaic_0001>

<bundles_post_ra>
// kernel: tpu_custom_call.1
= control target key start
LH: loop header
LB: loop body
LE: loop exit
PB: predicated region body
PF: predicated region fallthrough
CT: control target
= control target key end

     0   :  { %7 = vsyncpa [#allocation4], 0  ;;  %s865_s0 = inlined_call_operand.hbm [shape: f32[16,128], index: 0, kind: input, shape index: {}]   ;;  %s866_s1 = inlined_call_operand.hbm [shape: f32[16,128], index: 1, kind: input, shape index: {}]   ;;  %s867_s2 = inlined_call_operand.hbm [shape: f32[16,128], index: 2, kind: output, shape index: {}]  }
   0x1   :  { %9 = vsyncpa [#allocation4 + $0x1], 0 }
   0x2   :  { %10 = vsyncpa [#allocation7], 0 }
   0x3   :  { %12 = vsyncpa [#allocation7 + $0x1], 0 }
   0x4   :  { %13 = vsyncpa [#allocation5], 0 }
   0x5   :  { %15 = vsyncpa [#allocation5 + $0x1], 0  ;;  %s686_s9 = smov 0   ;;  %s688_s10 = smov 0  }
   0x6   :  { %s690_s11 = smov 0   ;;  %s692_s12 = smov 0  }
   0x7   :  { %s694_s13 = smov 0   ;;  %s696_s14 = smov 0  }
   0x8   :  { %s698_s15 = smov 0   ;;  %s700_s16 = smov 0  }
   0x9 LB: > { %s389_s17 = sadd.s32 4294967295, %s664_s16   ;;  %s390_s18 = sadd.s32 4294967294, %s664_s16   ;;  %s664_s16 = sphi %s700_s16, %s21_s16   ;;  %s660_s15 = sphi %s698_s15, %s886_s15   ;;  %s656_s14 = sphi %s696_s14, %s885_s14   ;;  %s652_s13 = sphi %s694_s13, %s855_s13   ;;  %s648_s12 = sphi %s692_s12, %s884_s12   ;;  %s644_s11 = sphi %s690_s11, %s883_s11   ;;  %s640_s10 = sphi %s688_s10, %s882_s10   ;;  %s636_s9 = sphi %s686_s9, %s881_s9  }
   0xa   : > { %s33_s19 = sadd.s32 1, %s660_s15  ;;  %p633_p1 = scmp.ne.s32.totalorder %s652_s13, 0 }
   0xb   : > { %p35_p0 = scmp.ge.s32.totalorder %s33_s19, 2  ;;  %p54_p2 = scmp.eq.s32.totalorder %s664_s16, 0 }
   0xc   : > { %p59_p3 = scmp.ne.s32.totalorder %s652_s13, %s648_s12  ;;  %p60_p5 = scmp.eq.s32.totalorder %s389_s17, 0 }
   0xd   : > { %s888_s19 = smov (%p35_p0, %s33_s19), 0  ;;  %p732_p4 = por %p633_p1, %p54_p2 }
   0xe   : > { %p736_p6 = por %p60_p5, %p59_p3  ;;  %s101_s22 = ssub.s32 %s660_s15, %s888_s19 }
   0xf   : > { %p102_p7 = scmp.eq.s32.totalorder %s101_s22, 0  ;;  %s104_s23 = sadd.s32 1, %s644_s11 }
  0x10   : > { %s871_s21 = scalar_select %p736_p6, 1, 0 }
  0x11   : > { %s744_s24 = scalar_select %p102_p7, %s644_s11, %s104_s23  }
  0x12   : > { %p114_p8 = scmp.ne.s32.totalorder %s644_s11, %s640_s10  ;;  %p115_p9 = scmp.eq.s32.totalorder %s389_s17, 1 }
  0x13   : > { %p120_p10 = scmp.ne.s32.totalorder %s640_s10, %s636_s9  ;;  %p121_p11 = scmp.eq.s32.totalorder %s390_s18, 1 }
  0x14   : > { %p750_p12 = por %p115_p9, %p114_p8  ;;  %p427_p1 = scmp.lt.s32.totalorder %s664_s16, 2 }
  0x15   : > { %p755_p0 = por %p121_p11, %p120_p10  ;;  %s666_s27 = smov [#allocation3]  }
  0x16   : > { %s872_s25 = scalar_select %p750_p12, 1, 0 }
  0x17   : > { %s873_s26 = scalar_select %p755_p0, 1, 0 }
  0x18   : > { %s155_s28 = sshll.u32 %s666_s27, 4  ;;  %p762_p2 = pnand %p427_p1, %p732_p4  ;;  %s156_s28 = int_to_ptr.vmem [resolvable:$true] %s155_s28 }
  0x19   : > { %s503_s4 = scalar_lea.hbm %s865_s0, 256 }
  0x1a   : > { %p504_p3 = scmp.ne.s32.totalorder %s865_s0, %s503_s4  ;;  %p505_p5 = pneg %p762_p2 }
  0x1b   : > { %p510_p8 = scmp.lt.s32.totalorder %s503_s4, %s503_s4 }
  0x1c   : > { %p506_p7 = pnand %p505_p5, %p504_p3 }
  0x1e   : > { %p507_p4 = pneg %p506_p7 }
  0x20   : > { %p512_p9 = pnand %p510_p8, %p507_p4 }
  0x22   : > { %515 = shalt.err (!%p512_p9)
}
  0x23   : > { %s516_s7 = scalar_lea.vmem %s156_s28, 256  ;;  %s523_s8 = scalar_lea.vmem %s156_s28, 512 }
  0x24   : > { %p517_p10 = scmp.ne.s32.totalorder %s156_s28, %s516_s7  ;;  %p524_p13 = scmp.lt.s32.totalorder %s156_s28, %s156_s28 }
  0x25   : > { %p525_p0 = scmp.lt.s32.totalorder %s523_s8, %s516_s7 }
  0x26   : > { %p519_p11 = pnand %p517_p10, %p505_p5 }
  0x27   : > { %p526_p12 = por %p525_p0, %p524_p13 }
  0x28   : > { %p520_p1 = pneg %p519_p11 }
  0x2a   : > { %p527_p6 = pnand %p526_p12, %p520_p1 }
  0x2c   : > { %530 = shalt.err (!%p527_p6)
}
  0x2d   : > { %s667_s12 = smov 128   ;;  %s668_s17 = smov 8  }
  0x2e   : > { %419 = dma.hbm_to_vmem [thread:$0]  (!%p762_p2), %s865_s0, 256, %s156_s28, [#allocation4], %s667_s12, %s667_s12, %s668_s17  }
  0x2f   : > { %p399_p3 = scmp.ge.s32.totalorder %s664_s16, 1  ;;  %p187_p7 = scmp.lt.s32.totalorder %s664_s16, 3 }
  0x30   : > { %s669_s23 = smov [#allocation6]   ;;  %s531_s4 = scalar_lea.hbm %s866_s1, 256 }
  0x31   : > { %p787_p4 = pnand %p399_p3, %p187_p7  ;;  %s179_s27 = sshll.u32 %s669_s23, 4  ;;  %s180_s27 = int_to_ptr.vmem [resolvable:$true] %s179_s27 }
  0x32   : > { %p532_p6 = scmp.ne.s32.totalorder %s866_s1, %s531_s4  ;;  %p538_p0 = scmp.lt.s32.totalorder %s531_s4, %s531_s4 }
  0x33   : > { %s875_s22 = scalar_select %p787_p4, 1, 0 }
  0x34   : > { %p534_p12 = pnand %p532_p6, %p505_p5 }
  0x36   : > { %p535_p13 = pneg %p534_p12 }
  0x38   : > { %p540_p8 = pnand %p538_p0, %p535_p13 }
  0x3a   : > { %543 = shalt.err (!%p540_p8)
}
  0x3b   : > { %s544_s28 = scalar_lea.vmem %s180_s27, 256  ;;  %s551_s7 = scalar_lea.vmem %s180_s27, 512 }
  0x3c   : > { %p545_p9 = scmp.ne.s32.totalorder %s180_s27, %s544_s28  ;;  %p552_p1 = scmp.lt.s32.totalorder %s180_s27, %s180_s27 }
  0x3d   : > { %p553_p3 = scmp.lt.s32.totalorder %s551_s7, %s544_s28 }
  0x3e   : > { %p547_p10 = pnand %p545_p9, %p505_p5 }
  0x3f   : > { %p554_p7 = por %p553_p3, %p552_p1 }
  0x40   : > { %p548_p11 = pneg %p547_p10 }
  0x42   : > { %p555_p4 = pnand %p554_p7, %p548_p11 }
  0x44   : > { %558 = shalt.err (!%p555_p4)
}
  0x45   : > { %422 = dma.hbm_to_vmem [thread:$0]  (!%p762_p2), %s866_s1, 256, %s180_s27, [#allocation7], %s667_s12, %s667_s12, %s668_s17  }
  0x46   : > { %p876_p6 = scmp.ne.s32.totalorder %s875_s22, 0 }
  0x47   : > { %s193_s20 = sand.u32 (!%p876_p6), 1, %s652_s13   ;;  %p877_p5 = scmp.ne.s32.totalorder (!%p876_p6), %s871_s21, 0 }
  0x48   : > { %191 = sbr.rel (%p876_p6) target bundleno = 106 (0x6a), region = 28  ;;  %s400_s23 = sshll.u32 (!%p876_p6), %s193_s20, 4 }
  0x49   : > { %s194_s30 = scalar_lea.sflag (!%p876_p6), [#allocation4], %s193_s20  ;;  %s197_s3 = scalar_lea.vmem (!%p876_p6), [#allocation3], %s400_s23 }
  0x4d   : > { %622 = dma.done.wait (%p877_p5), %s194_s30, 256  }
  0x4e   : > { %624 = vsyncadd (%p877_p5), %s194_s30, 4294967040  ;;  %s203_s29 = scalar_lea.sflag [#allocation7], %s193_s20  ;;  %s206_s4 = scalar_lea.vmem [#allocation6], %s400_s23 }
  0x4f   : > { %626 = dma.done.wait (%p877_p5), %s203_s29, 256  }
  0x50   : > { %628 = vsyncadd (%p877_p5), %s203_s29, 4294967040  ;;  %s403_s12 = sshll.u32 %s656_s14, 4  ;;  %v255_v0 = vlaneseq  ;;  %s229_s17 = sand.u32 1, %s640_s10   ;;  %v245_v6 = vld [vmem:[%s197_s3] sm:$0xff]  ;;  %v246_v7 = vld [vmem:[%s197_s3 + $0x8] sm:$0xff] }
  0x51   : > { %v258_v2 = vstv %s403_s12  ;;  %s402_s22 = sshll.u32 %s229_s17, 3  ;;  %v247_v8 = vld [vmem:[%s206_s4] sm:$0xff]  ;;  %v248_v9 = vld [vmem:[%s206_s4 + $0x8] sm:$0xff]  ;;  %s405_s5 = sshll.u32 %s656_s14, 7 }
  0x52   : > { %v256_v1 = vshrl.u32 %v255_v0, 7  ;;  %v249_v10 = vsub.f32 %v245_v6, %v247_v8  ;;  %v250_v11 = vsub.f32 %v246_v7, %v248_v9  ;;  %s231_s21 = scalar_lea.vmem [#allocation8], %s402_s22  ;;  %s286_s7 = scalar_lea.hbm %s867_s2, %s405_s5 }
  0x53   : > { %s288_s27 = sshll.u32 %s231_s21, 4  ;;  %s275_s8 = scalar_lea.sflag [#allocation5], %s229_s17  ;;  %s289_s27 = int_to_ptr.vmem [resolvable:$true] %s288_s27 }
  0x54   : > { %v257_v3 = vadd.s32 8, %v256_v1  ;;  %v259_v4 = vadd.s32 %v258_v2, %v256_v1  ;;  %v251_v12 = vmul.f32 %v249_v10, %v249_v10  ;;  %v252_v13 = vmul.f32 %v250_v11, %v250_v11  ;;  %s559_s18 = scalar_lea.vmem %s289_s27, 128  ;;  %p878_p4 = scmp.ne.s32.totalorder %s872_s25, 0 }
  0x55   : > { %p560_p2 = scmp.ne.s32.totalorder %s289_s27, %s559_s18  ;;  %s670_s20 = smov [#allocation8]  }
  0x56   : > { %v260_v5 = vadd.s32 %v258_v2, %v257_v3  ;;  %vm261_vm0 = vcmp.lt.s32.totalorder %v259_v4, 16  ;;  %s563_s23 = sshll.u32 %s670_s20, 4  ;;  %s564_s23 = int_to_ptr.vmem [resolvable:$false] %s563_s23 }
  0x57   : > { %v263_v14 = vsel %vm261_vm0, %v251_v12, 0.0  ;;  %p561_p12 = pnand %p560_p2, %p878_p4  ;;  %s565_s30 = scalar_lea.vmem %s564_s23, 256 }
  0x58   : > { %vm262_vm1 = vcmp.lt.s32.totalorder %v260_v5, 16  ;;  %p566_p0 = scmp.lt.s32.totalorder %s289_s27, %s564_s23  ;;  %p567_p8 = scmp.lt.s32.totalorder %s565_s30, %s559_s18 }
  0x59   : > { %v264_v15 = vsel %vm262_vm1, %v252_v13, 0.0  ;;  %p562_p13 = pneg %p561_p12 }
  0x5a   : > { %v266_v16 = vadd.f32 %v264_v15, %v263_v14  ;;  %p568_p9 = por %p567_p8, %p566_p0 }
  0x5c   : > { %273 = vst [vmem:[%s231_s21] sm:$0xff] %v266_v16  ;;  %p569_p10 = pnand %p568_p9, %p562_p13 }
  0x5e   : > { %572 = shalt.err (!%p569_p10)
}
  0x5f   : > { %s573_s14 = scalar_lea.hbm %s286_s7, 128  ;;  %s577_s4 = scalar_lea.hbm %s867_s2, 256 }
  0x60   : > { %p574_p11 = scmp.ne.s32.totalorder %s286_s7, %s573_s14  ;;  %p578_p7 = scmp.lt.s32.totalorder %s286_s7, %s867_s2 }
  0x61   : > { %p579_p6 = scmp.lt.s32.totalorder %s577_s4, %s573_s14 }
  0x62   : > { %p575_p1 = pnand %p574_p11, %p878_p4 }
  0x63   : > { %p580_p5 = por %p579_p6, %p578_p7 }
  0x64   : > { %p576_p3 = pneg %p575_p1 }
  0x66   : > { %p581_p2 = pnand %p580_p5, %p576_p3 }
  0x68   : > { %584 = shalt.err (!%p581_p2)
}
  0x69   : > { %414 = dma.vmem_to_hbm [thread:$0]  (%p878_p4), %s289_s27, 128, %s286_s7, %s275_s8  }
  0x6a PF: > { %s300_s22 = sand.u32 1, %s636_s9   ;;  %p879_p12 = scmp.ne.s32.totalorder %s873_s26, 0 }
  0x6b   : > { %p880_p13 = scmp.ge.s32.totalorder %s664_s16, 2  ;;  %s301_s21 = scalar_lea.sflag [#allocation5], %s300_s22 }
  0x6d   : > { %p424_p0 = pnand %p880_p13, %p879_p12 }
  0x6f   : > { %p425_p8 = pneg %p424_p0 }
  0x71   : > { %630 = dma.done.wait (%p425_p8), %s301_s21, 128  }
  0x72   : > { %632 = vsyncadd (%p425_p8), %s301_s21, 4294967168  ;;  %s21_s16 = sadd.s32 1, %s664_s16   ;;  %s881_s9 = smov %s640_s10 }
  0x73   : > { %p18_p9 = scmp.ge.s32.totalorder %s21_s16, 4   ;;  %s882_s10 = smov %s644_s11 }
  0x74   : > { %s883_s11 = smov %s744_s24  ;;  %s884_s12 = smov %s652_s13 }
  0x75   : > { %s855_s13 = smov 0   ;;  %s885_s14 = smov %s660_s15 }
  0x76   : > { %s886_s15 = smov %s888_s19  ;;  %20 = sbr.rel (!%p18_p9) target bundleno = 9 (0x9), region = 94 }
  0x7b   :  { %306 = vsyncpa [#allocation4], 1 }
  0x7c   :  { %308 = vsyncpa [#allocation4 + $0x1], 1 }
  0x7d   :  { %309 = vsyncpa [#allocation7], 1 }
  0x7e   :  { %311 = vsyncpa [#allocation7 + $0x1], 1 }
  0x7f   :  { %312 = vsyncpa [#allocation5], 1 }
  0x80   :  { %314 = vsyncpa [#allocation5 + $0x1], 1 }

</bundles_post_ra>
